<compile_context>
chip_gen: v6e
topology: v6e:2x2x1
jax: 0.10.0
libtpu: 0.0.40
codegen_flags: <defaults>
</compile_context>

<pallas_src>
import math
from functools import partial

import jax
import jax.numpy as jnp
from jax import lax
from jax.experimental import pallas as pl
from jax.experimental.pallas import tpu as pltpu


# ----------------------------------------------------------------------------
# Pallas kernel: one batch element (sequence) per grid step.
#   x_ref    : (S, D)         bf16   hidden rows of this sequence
#   wqkv_ref : (D, 3*H*d_kv)  bf16   fused [Q | K | V] weights (all heads);
#                                    1/sqrt(d_kv) folded into new-head Q cols
#   wo_ref   : (H*d_kv, D)    bf16   fused output weights;
#                                    sigmoid(gate)*0.07 folded into new rows
#   o_ref    : (S, D)         f32
# ----------------------------------------------------------------------------
def expanded_mha_kernel(x_ref, wqkv_ref, wo_ref, o_ref, *, n_total_heads, d_kv):
    Hd = n_total_heads * d_kv
    S = x_ref.shape[0]
    D = wo_ref.shape[1]

    # ---- one fused projection matmul for q/k/v of ALL heads (orig + new) ----
    x = x_ref[...]                                                # (S, D) bf16
    qkv = jnp.dot(x, wqkv_ref[...],
                  preferred_element_type=jnp.float32)             # (S, 3*Hd) f32 acc
    qkv = qkv.astype(jnp.bfloat16)                                # bf16 MXU operands below

    # ---- per-head attention accumulated straight into the output ----
    # out = sum_h ctx_h @ Wo[h*d_kv:(h+1)*d_kv, :]  ==  ctx_slab @ Wo, but with
    # no context slab: no masked partial-lane stores, no concatenate; the only
    # store in the kernel is the single lane-dense (S, D) write at the end.
    acc = jnp.zeros((S, D), jnp.float32)
    for h in range(n_total_heads):                                # static unroll over H only
        c0 = h * d_kv
        qh = qkv[:, c0:c0 + d_kv]                                 # (S, d_kv) bf16
        kh = qkv[:, Hd + c0:Hd + c0 + d_kv]                       # (S, d_kv) bf16
        vh = qkv[:, 2 * Hd + c0:2 * Hd + c0 + d_kv]               # (S, d_kv) bf16

        # scores: contract the d_kv dims directly (no transpose / relayout).
        s = lax.dot_general(qh, kh, (((1,), (1,)), ((), ())),
                            preferred_element_type=jnp.float32)   # (S, S) f32
        s = s - jnp.max(s, axis=-1, keepdims=True)
        p = jnp.exp(s)
        denom = jnp.sum(p, axis=-1, keepdims=True)
        # approx reciprocal runs on the EUP slot; fine for eval inference
        # (use approx=False / exact divide if reused for training-grade logits).
        p = (p * pl.reciprocal(denom, approx=True)).astype(jnp.bfloat16)

        ctx_h = jnp.dot(p, vh,
                        preferred_element_type=jnp.float32).astype(jnp.bfloat16)  # (S, d_kv)
        wo_h = wo_ref[c0:c0 + d_kv, :]                            # (d_kv, D) bf16, static slice
        acc = acc + jnp.dot(ctx_h, wo_h, preferred_element_type=jnp.float32)

    o_ref[...] = acc.astype(o_ref.dtype)                          # one lane-dense (S, D) store


# ----------------------------------------------------------------------------
# Weight preparation: pure function of the frozen params — call ONCE, reuse
# across forward calls (do NOT rebuild per call).
# ----------------------------------------------------------------------------
def prepare_expanded_mha_weights(params, *, d_kv, training=False,
                                 compute_dtype=jnp.bfloat16):
    base_contribution = 0.1 if training else 0.07
    gate_value = (jax.nn.sigmoid(params["gate"].astype(jnp.float32))
                  * base_contribution)

    # PyTorch Linear weights are (out, in); transpose so the kernel does x @ W.
    # Fold the new-head 1/sqrt(d_kv) score scale into their Q columns and the
    # sigmoid(gate)*base factor into their O rows, so the kernel sees one
    # uniform H-head MHA followed by a plain output projection.
    q_fused = jnp.concatenate(
        [params["wq"].T, params["nwq"].T * (1.0 / math.sqrt(d_kv))], axis=1)   # (D, Hd)
    k_fused = jnp.concatenate([params["wk"].T, params["nwk"].T], axis=1)       # (D, Hd)
    v_fused = jnp.concatenate([params["wv"].T, params["nwv"].T], axis=1)       # (D, Hd)
    wqkv = jnp.concatenate([q_fused, k_fused, v_fused],
                           axis=1).astype(compute_dtype)                        # (D, 3*Hd)
    wo_fused = jnp.concatenate(
        [params["wo"].T, params["nwo"].T * gate_value],
        axis=0).astype(compute_dtype)                                           # (Hd, D)
    return {"wqkv": wqkv, "wo": wo_fused}


# ----------------------------------------------------------------------------
# Forward wrapper
# ----------------------------------------------------------------------------
def expanded_mha_forward(hidden_states, fused_weights, *, n_heads, d_kv,
                         n_new_heads, compute_dtype=jnp.bfloat16,
                         vmem_limit_bytes=64 * 1024 * 1024):
    B, S, D = hidden_states.shape
    H = n_heads + n_new_heads
    Hd = H * d_kv

    # Flatten (B, S, D) -> (B*S, D) outside the kernel (free in XLA); the grid
    # walks one sequence of S rows per step, so DMAs pipeline across steps and
    # the "parallel" axis maps onto both TensorCores on v7x.
    x2d = hidden_states.reshape(B * S, D).astype(compute_dtype)

    kern = partial(expanded_mha_kernel, n_total_heads=H, d_kv=d_kv)

    out2d = pl.pallas_call(
        kern,
        # Keep f32 output (module dtype). Switch to bf16 to halve HBM
        # writeback if the downstream consumer tolerates it.
        out_shape=jax.ShapeDtypeStruct((B * S, D), jnp.float32),
        grid=(B,),
        in_specs=[
            pl.BlockSpec((S, D), lambda b: (b, 0)),                 # hidden rows (pipelined)
            pl.BlockSpec((D, 3 * Hd), lambda b: (0, 0),
                         pipeline_mode=pl.Buffered(1)),             # constant weights: single buffer
            pl.BlockSpec((Hd, D), lambda b: (0, 0),
                         pipeline_mode=pl.Buffered(1)),             # constant weights: single buffer
        ],
        out_specs=pl.BlockSpec((S, D), lambda b: (b, 0)),
        compiler_params=pltpu.CompilerParams(
            dimension_semantics=("parallel",),
            # Above the 32 MiB scoped default; the demo working set is tiny.
            # At real T5 scale: grow toward 96 MiB on v5e/v6e (128 MiB VMEM),
            # cap around 48 MiB on v7x (64 MiB VMEM).
            vmem_limit_bytes=vmem_limit_bytes),
    )(x2d, fused_weights["wqkv"], fused_weights["wo"])

    return out2d.reshape(B, S, D)


# ----------------------------------------------------------------------------
# Pure-JAX f32 reference mirroring the PyTorch forward (eval, no mask/bias)
# ----------------------------------------------------------------------------
def reference_forward(hidden_states, params, *, n_heads, d_kv, n_new_heads,
                      training=False):
    B, S, D = hidden_states.shape

    def mha(x, wq, wk, wv, wo, heads, scale):
        q = (x @ wq.T).reshape(B, S, heads, d_kv).transpose(0, 2, 1, 3)
        k = (x @ wk.T).reshape(B, S, heads, d_kv).transpose(0, 2, 1, 3)
        v = (x @ wv.T).reshape(B, S, heads, d_kv).transpose(0, 2, 1, 3)
        scores = jnp.einsum("bhqd,bhkd->bhqk", q, k) * scale
        p = jax.nn.softmax(scores, axis=-1)
        ctx = jnp.einsum("bhqk,bhkd->bhqd", p, v)
        ctx = ctx.transpose(0, 2, 1, 3).reshape(B, S, heads * d_kv)
        return ctx @ wo.T

    orig = mha(hidden_states, params["wq"], params["wk"], params["wv"],
               params["wo"], n_heads, 1.0)                          # T5: no scaling
    new = mha(hidden_states, params["nwq"], params["nwk"], params["nwv"],
              params["nwo"], n_new_heads, 1.0 / math.sqrt(d_kv))
    base_contribution = 0.1 if training else 0.07
    gate_value = jax.nn.sigmoid(params["gate"]) * base_contribution
    return orig + gate_value * new


# ----------------------------------------------------------------------------
# Main
# ----------------------------------------------------------------------------
if __name__ == "__main__":
    B, S, D = 2, 8, 32          # batch, seq_len, d_model
    n_heads, d_kv = 4, 8        # original heads
    n_new_heads = 1             # NUM_NEW_ATTENTION_HEADS
    inner = n_heads * d_kv
    new_dim = n_new_heads * d_kv

    key = jax.random.PRNGKey(0)
    (k_h, k_q, k_k, k_v, k_o,
     k_nq, k_nk, k_nv, k_no) = jax.random.split(key, 9)

    hidden = jax.random.normal(k_h, (B, S, D), jnp.float32)

    # Frozen "original_attention" weights (PyTorch Linear layout: (out, in)).
    wq = jax.random.normal(k_q, (inner, D), jnp.float32) * 0.05
    wk = jax.random.normal(k_k, (inner, D), jnp.float32) * 0.05
    wv = jax.random.normal(k_v, (inner, D), jnp.float32) * 0.05
    wo = jax.random.normal(k_o, (D, inner), jnp.float32) * 0.05

    # New-head weights: slice of original rows/cols + gaussian noise (std 0.1),
    # mirroring the module's __init__ (new_head_dim <= orig_head_dim branch).
    noise_std = 0.1
    nwq = wq[:new_dim, :] + jax.random.normal(k_nq, (new_dim, D), jnp.float32) * noise_std
    nwk = wk[:new_dim, :] + jax.random.normal(k_nk, (new_dim, D), jnp.float32) * noise_std
    nwv = wv[:new_dim, :] + jax.random.normal(k_nv, (new_dim, D), jnp.float32) * noise_std
    nwo = wo[:, :new_dim] + jax.random.normal(k_no, (D, new_dim), jnp.float32) * noise_std

    params = dict(wq=wq, wk=wk, wv=wv, wo=wo,
                  nwq=nwq, nwk=nwk, nwv=nwv, nwo=nwo,
                  gate=jnp.float32(0.0))

    # Precompute the fused weights ONCE (pure function of frozen params).
    fused = prepare_expanded_mha_weights(params, d_kv=d_kv, training=False)
    fused = jax.tree_util.tree_map(jax.block_until_ready, fused)

    out = expanded_mha_forward(hidden, fused,
                               n_heads=n_heads, d_kv=d_kv,
                               n_new_heads=n_new_heads)
    out = jax.block_until_ready(out)

    ref = reference_forward(hidden, params,
                            n_heads=n_heads, d_kv=d_kv,
                            n_new_heads=n_new_heads, training=False)

    assert out.shape == (B, S, D) and out.dtype == jnp.float32
    # bf16 matmul operands (+ approx reciprocal) vs. a pure-f32 reference:
    # expected |err| ~1e-3; 2e-2 tolerance leaves ample margin.
    max_err = float(jnp.max(jnp.abs(out - ref)))
    assert jnp.allclose(out, ref, atol=2e-2, rtol=2e-2), f"max abs err = {max_err}"

    print("KERNEL_OK")
</pallas_src>

<mosaic_0001>
module attributes {stable_mosaic.version = 11 : i64} {
  func.func @expanded_mha_kernel(%arg0: i32, %arg1: memref<8x32xbf16, #tpu.memory_space<vmem>>, %arg2: memref<32x120xbf16, #tpu.memory_space<vmem>>, %arg3: memref<40x32xbf16, #tpu.memory_space<vmem>>, %arg4: memref<8x32xf32, #tpu.memory_space<vmem>>) attributes {dimension_semantics = [#tpu.dimension_semantics<parallel>], iteration_bounds = array<i64: 2>, scalar_prefetch = 0 : i64, scratch_operands = 0 : i64, tpu.core_type = #tpu.core_type<tc>, window_params = [{transform_indices = @transform_0, window_bounds = array<i64: 8, 32>}, {pipeline_mode = #tpu.pipeline_mode<synchronous>, transform_indices = @transform_1, window_bounds = array<i64: 32, 120>}, {pipeline_mode = #tpu.pipeline_mode<synchronous>, transform_indices = @transform_2, window_bounds = array<i64: 40, 32>}, {transform_indices = @transform_3, window_bounds = array<i64: 8, 32>}]} {
    %c0 = arith.constant 0 : index
    %c0_0 = arith.constant 0 : index
    %0 = vector.load %arg1[%c0, %c0_0] : memref<8x32xbf16, #tpu.memory_space<vmem>>, vector<8x32xbf16>
    %c0_1 = arith.constant 0 : index
    %c0_2 = arith.constant 0 : index
    %1 = vector.load %arg2[%c0_1, %c0_2] : memref<32x120xbf16, #tpu.memory_space<vmem>>, vector<32x120xbf16>
    %cst = arith.constant dense<0.000000e+00> : vector<8x120xf32>
    %2 = tpu.matmul %0, %1, %cst {dimension_numbers = #tpu.dot_dimension_numbers<[1], [0], [0], [1], [0, 0, 1, 1], [], []>} : vector<8x32xbf16>, vector<32x120xbf16>, vector<8x120xf32> -> vector<8x120xf32>
    %3 = arith.truncf %2 : vector<8x120xf32> to vector<8x120xbf16>
    %cst_3 = arith.constant 0.000000e+00 : f32
    %4 = vector.broadcast %cst_3 : f32 to vector<8x32xf32>
    %5 = vector.extract_strided_slice %3 {offsets = [0, 0], sizes = [8, 8], strides = [1, 1]} : vector<8x120xbf16> to vector<8x8xbf16>
    %6 = vector.extract_strided_slice %3 {offsets = [0, 40], sizes = [8, 8], strides = [1, 1]} : vector<8x120xbf16> to vector<8x8xbf16>
    %7 = vector.extract_strided_slice %3 {offsets = [0, 80], sizes = [8, 8], strides = [1, 1]} : vector<8x120xbf16> to vector<8x8xbf16>
    %cst_4 = arith.constant dense<0.000000e+00> : vector<8x8xf32>
    %8 = tpu.matmul %5, %6, %cst_4 {dimension_numbers = #tpu.dot_dimension_numbers<[1], [1], [0], [0], [0, 0, 1, 0], [], []>} : vector<8x8xbf16>, vector<8x8xbf16>, vector<8x8xf32> -> vector<8x8xf32>
    %cst_5 = arith.constant dense<0xFF800000> : vector<8xf32>
    %9 = vector.multi_reduction <maximumf>, %8, %cst_5 [1] : vector<8x8xf32> to vector<8xf32>
    %10 = vector.shape_cast %9 : vector<8xf32> to vector<8x1xf32>
    %11 = vector.broadcast %10 : vector<8x1xf32> to vector<8x8xf32>
    %12 = arith.subf %8, %11 : vector<8x8xf32>
    %13 = math.exp %12 : vector<8x8xf32>
    %cst_6 = arith.constant dense<0.000000e+00> : vector<8xf32>
    %14 = vector.multi_reduction <add>, %13, %cst_6 [1] : vector<8x8xf32> to vector<8xf32>
    %15 = vector.shape_cast %14 : vector<8xf32> to vector<8x1xf32>
    %16 = tpu.reciprocal %15 {approx = true} : vector<8x1xf32> -> vector<8x1xf32>
    %17 = vector.broadcast %16 : vector<8x1xf32> to vector<8x8xf32>
    %18 = arith.mulf %13, %17 : vector<8x8xf32>
    %19 = arith.truncf %18 : vector<8x8xf32> to vector<8x8xbf16>
    %cst_7 = arith.constant dense<0.000000e+00> : vector<8x8xf32>
    %20 = tpu.matmul %19, %7, %cst_7 {dimension_numbers = #tpu.dot_dimension_numbers<[1], [0], [0], [1], [0, 0, 1, 1], [], []>} : vector<8x8xbf16>, vector<8x8xbf16>, vector<8x8xf32> -> vector<8x8xf32>
    %21 = arith.truncf %20 : vector<8x8xf32> to vector<8x8xbf16>
    %c0_8 = arith.constant 0 : index
    %c0_9 = arith.constant 0 : index
    %22 = vector.load %arg3[%c0_8, %c0_9] : memref<40x32xbf16, #tpu.memory_space<vmem>>, vector<8x32xbf16>
    %cst_10 = arith.constant dense<0.000000e+00> : vector<8x32xf32>
    %23 = tpu.matmul %21, %22, %cst_10 {dimension_numbers = #tpu.dot_dimension_numbers<[1], [0], [0], [1], [0, 0, 1, 1], [], []>} : vector<8x8xbf16>, vector<8x32xbf16>, vector<8x32xf32> -> vector<8x32xf32>
    %24 = arith.addf %4, %23 : vector<8x32xf32>
    %25 = vector.extract_strided_slice %3 {offsets = [0, 8], sizes = [8, 8], strides = [1, 1]} : vector<8x120xbf16> to vector<8x8xbf16>
    %26 = vector.extract_strided_slice %3 {offsets = [0, 48], sizes = [8, 8], strides = [1, 1]} : vector<8x120xbf16> to vector<8x8xbf16>
    %27 = vector.extract_strided_slice %3 {offsets = [0, 88], sizes = [8, 8], strides = [1, 1]} : vector<8x120xbf16> to vector<8x8xbf16>
    %cst_11 = arith.constant dense<0.000000e+00> : vector<8x8xf32>
    %28 = tpu.matmul %25, %26, %cst_11 {dimension_numbers = #tpu.dot_dimension_numbers<[1], [1], [0], [0], [0, 0, 1, 0], [], []>} : vector<8x8xbf16>, vector<8x8xbf16>, vector<8x8xf32> -> vector<8x8xf32>
    %cst_12 = arith.constant dense<0xFF800000> : vector<8xf32>
    %29 = vector.multi_reduction <maximumf>, %28, %cst_12 [1] : vector<8x8xf32> to vector<8xf32>
    %30 = vector.shape_cast %29 : vector<8xf32> to vector<8x1xf32>
    %31 = vector.broadcast %30 : vector<8x1xf32> to vector<8x8xf32>
    %32 = arith.subf %28, %31 : vector<8x8xf32>
    %33 = math.exp %32 : vector<8x8xf32>
    %cst_13 = arith.constant dense<0.000000e+00> : vector<8xf32>
    %34 = vector.multi_reduction <add>, %33, %cst_13 [1] : vector<8x8xf32> to vector<8xf32>
    %35 = vector.shape_cast %34 : vector<8xf32> to vector<8x1xf32>
    %36 = tpu.reciprocal %35 {approx = true} : vector<8x1xf32> -> vector<8x1xf32>
    %37 = vector.broadcast %36 : vector<8x1xf32> to vector<8x8xf32>
    %38 = arith.mulf %33, %37 : vector<8x8xf32>
    %39 = arith.truncf %38 : vector<8x8xf32> to vector<8x8xbf16>
    %cst_14 = arith.constant dense<0.000000e+00> : vector<8x8xf32>
    %40 = tpu.matmul %39, %27, %cst_14 {dimension_numbers = #tpu.dot_dimension_numbers<[1], [0], [0], [1], [0, 0, 1, 1], [], []>} : vector<8x8xbf16>, vector<8x8xbf16>, vector<8x8xf32> -> vector<8x8xf32>
    %41 = arith.truncf %40 : vector<8x8xf32> to vector<8x8xbf16>
    %c8 = arith.constant 8 : index
    %c0_15 = arith.constant 0 : index
    %42 = vector.load %arg3[%c8, %c0_15] : memref<40x32xbf16, #tpu.memory_space<vmem>>, vector<8x32xbf16>
    %cst_16 = arith.constant dense<0.000000e+00> : vector<8x32xf32>
    %43 = tpu.matmul %41, %42, %cst_16 {dimension_numbers = #tpu.dot_dimension_numbers<[1], [0], [0], [1], [0, 0, 1, 1], [], []>} : vector<8x8xbf16>, vector<8x32xbf16>, vector<8x32xf32> -> vector<8x32xf32>
    %44 = arith.addf %24, %43 : vector<8x32xf32>
    %45 = vector.extract_strided_slice %3 {offsets = [0, 16], sizes = [8, 8], strides = [1, 1]} : vector<8x120xbf16> to vector<8x8xbf16>
    %46 = vector.extract_strided_slice %3 {offsets = [0, 56], sizes = [8, 8], strides = [1, 1]} : vector<8x120xbf16> to vector<8x8xbf16>
    %47 = vector.extract_strided_slice %3 {offsets = [0, 96], sizes = [8, 8], strides = [1, 1]} : vector<8x120xbf16> to vector<8x8xbf16>
    %cst_17 = arith.constant dense<0.000000e+00> : vector<8x8xf32>
    %48 = tpu.matmul %45, %46, %cst_17 {dimension_numbers = #tpu.dot_dimension_numbers<[1], [1], [0], [0], [0, 0, 1, 0], [], []>} : vector<8x8xbf16>, vector<8x8xbf16>, vector<8x8xf32> -> vector<8x8xf32>
    %cst_18 = arith.constant dense<0xFF800000> : vector<8xf32>
    %49 = vector.multi_reduction <maximumf>, %48, %cst_18 [1] : vector<8x8xf32> to vector<8xf32>
    %50 = vector.shape_cast %49 : vector<8xf32> to vector<8x1xf32>
    %51 = vector.broadcast %50 : vector<8x1xf32> to vector<8x8xf32>
    %52 = arith.subf %48, %51 : vector<8x8xf32>
    %53 = math.exp %52 : vector<8x8xf32>
    %cst_19 = arith.constant dense<0.000000e+00> : vector<8xf32>
    %54 = vector.multi_reduction <add>, %53, %cst_19 [1] : vector<8x8xf32> to vector<8xf32>
    %55 = vector.shape_cast %54 : vector<8xf32> to vector<8x1xf32>
    %56 = tpu.reciprocal %55 {approx = true} : vector<8x1xf32> -> vector<8x1xf32>
    %57 = vector.broadcast %56 : vector<8x1xf32> to vector<8x8xf32>
    %58 = arith.mulf %53, %57 : vector<8x8xf32>
    %59 = arith.truncf %58 : vector<8x8xf32> to vector<8x8xbf16>
    %cst_20 = arith.constant dense<0.000000e+00> : vector<8x8xf32>
    %60 = tpu.matmul %59, %47, %cst_20 {dimension_numbers = #tpu.dot_dimension_numbers<[1], [0], [0], [1], [0, 0, 1, 1], [], []>} : vector<8x8xbf16>, vector<8x8xbf16>, vector<8x8xf32> -> vector<8x8xf32>
    %61 = arith.truncf %60 : vector<8x8xf32> to vector<8x8xbf16>
    %c16 = arith.constant 16 : index
    %c0_21 = arith.constant 0 : index
    %62 = vector.load %arg3[%c16, %c0_21] : memref<40x32xbf16, #tpu.memory_space<vmem>>, vector<8x32xbf16>
    %cst_22 = arith.constant dense<0.000000e+00> : vector<8x32xf32>
    %63 = tpu.matmul %61, %62, %cst_22 {dimension_numbers = #tpu.dot_dimension_numbers<[1], [0], [0], [1], [0, 0, 1, 1], [], []>} : vector<8x8xbf16>, vector<8x32xbf16>, vector<8x32xf32> -> vector<8x32xf32>
    %64 = arith.addf %44, %63 : vector<8x32xf32>
    %65 = vector.extract_strided_slice %3 {offsets = [0, 24], sizes = [8, 8], strides = [1, 1]} : vector<8x120xbf16> to vector<8x8xbf16>
    %66 = vector.extract_strided_slice %3 {offsets = [0, 64], sizes = [8, 8], strides = [1, 1]} : vector<8x120xbf16> to vector<8x8xbf16>
    %67 = vector.extract_strided_slice %3 {offsets = [0, 104], sizes = [8, 8], strides = [1, 1]} : vector<8x120xbf16> to vector<8x8xbf16>
    %cst_23 = arith.constant dense<0.000000e+00> : vector<8x8xf32>
    %68 = tpu.matmul %65, %66, %cst_23 {dimension_numbers = #tpu.dot_dimension_numbers<[1], [1], [0], [0], [0, 0, 1, 0], [], []>} : vector<8x8xbf16>, vector<8x8xbf16>, vector<8x8xf32> -> vector<8x8xf32>
    %cst_24 = arith.constant dense<0xFF800000> : vector<8xf32>
    %69 = vector.multi_reduction <maximumf>, %68, %cst_24 [1] : vector<8x8xf32> to vector<8xf32>
    %70 = vector.shape_cast %69 : vector<8xf32> to vector<8x1xf32>
    %71 = vector.broadcast %70 : vector<8x1xf32> to vector<8x8xf32>
    %72 = arith.subf %68, %71 : vector<8x8xf32>
    %73 = math.exp %72 : vector<8x8xf32>
    %cst_25 = arith.constant dense<0.000000e+00> : vector<8xf32>
    %74 = vector.multi_reduction <add>, %73, %cst_25 [1] : vector<8x8xf32> to vector<8xf32>
    %75 = vector.shape_cast %74 : vector<8xf32> to vector<8x1xf32>
    %76 = tpu.reciprocal %75 {approx = true} : vector<8x1xf32> -> vector<8x1xf32>
    %77 = vector.broadcast %76 : vector<8x1xf32> to vector<8x8xf32>
    %78 = arith.mulf %73, %77 : vector<8x8xf32>
    %79 = arith.truncf %78 : vector<8x8xf32> to vector<8x8xbf16>
    %cst_26 = arith.constant dense<0.000000e+00> : vector<8x8xf32>
    %80 = tpu.matmul %79, %67, %cst_26 {dimension_numbers = #tpu.dot_dimension_numbers<[1], [0], [0], [1], [0, 0, 1, 1], [], []>} : vector<8x8xbf16>, vector<8x8xbf16>, vector<8x8xf32> -> vector<8x8xf32>
    %81 = arith.truncf %80 : vector<8x8xf32> to vector<8x8xbf16>
    %c24 = arith.constant 24 : index
    %c0_27 = arith.constant 0 : index
    %82 = vector.load %arg3[%c24, %c0_27] : memref<40x32xbf16, #tpu.memory_space<vmem>>, vector<8x32xbf16>
    %cst_28 = arith.constant dense<0.000000e+00> : vector<8x32xf32>
    %83 = tpu.matmul %81, %82, %cst_28 {dimension_numbers = #tpu.dot_dimension_numbers<[1], [0], [0], [1], [0, 0, 1, 1], [], []>} : vector<8x8xbf16>, vector<8x32xbf16>, vector<8x32xf32> -> vector<8x32xf32>
    %84 = arith.addf %64, %83 : vector<8x32xf32>
    %85 = vector.extract_strided_slice %3 {offsets = [0, 32], sizes = [8, 8], strides = [1, 1]} : vector<8x120xbf16> to vector<8x8xbf16>
    %86 = vector.extract_strided_slice %3 {offsets = [0, 72], sizes = [8, 8], strides = [1, 1]} : vector<8x120xbf16> to vector<8x8xbf16>
    %87 = vector.extract_strided_slice %3 {offsets = [0, 112], sizes = [8, 8], strides = [1, 1]} : vector<8x120xbf16> to vector<8x8xbf16>
    %cst_29 = arith.constant dense<0.000000e+00> : vector<8x8xf32>
    %88 = tpu.matmul %85, %86, %cst_29 {dimension_numbers = #tpu.dot_dimension_numbers<[1], [1], [0], [0], [0, 0, 1, 0], [], []>} : vector<8x8xbf16>, vector<8x8xbf16>, vector<8x8xf32> -> vector<8x8xf32>
    %cst_30 = arith.constant dense<0xFF800000> : vector<8xf32>
    %89 = vector.multi_reduction <maximumf>, %88, %cst_30 [1] : vector<8x8xf32> to vector<8xf32>
    %90 = vector.shape_cast %89 : vector<8xf32> to vector<8x1xf32>
    %91 = vector.broadcast %90 : vector<8x1xf32> to vector<8x8xf32>
    %92 = arith.subf %88, %91 : vector<8x8xf32>
    %93 = math.exp %92 : vector<8x8xf32>
    %cst_31 = arith.constant dense<0.000000e+00> : vector<8xf32>
    %94 = vector.multi_reduction <add>, %93, %cst_31 [1] : vector<8x8xf32> to vector<8xf32>
    %95 = vector.shape_cast %94 : vector<8xf32> to vector<8x1xf32>
    %96 = tpu.reciprocal %95 {approx = true} : vector<8x1xf32> -> vector<8x1xf32>
    %97 = vector.broadcast %96 : vector<8x1xf32> to vector<8x8xf32>
    %98 = arith.mulf %93, %97 : vector<8x8xf32>
    %99 = arith.truncf %98 : vector<8x8xf32> to vector<8x8xbf16>
    %cst_32 = arith.constant dense<0.000000e+00> : vector<8x8xf32>
    %100 = tpu.matmul %99, %87, %cst_32 {dimension_numbers = #tpu.dot_dimension_numbers<[1], [0], [0], [1], [0, 0, 1, 1], [], []>} : vector<8x8xbf16>, vector<8x8xbf16>, vector<8x8xf32> -> vector<8x8xf32>
    %101 = arith.truncf %100 : vector<8x8xf32> to vector<8x8xbf16>
    %c32 = arith.constant 32 : index
    %c0_33 = arith.constant 0 : index
    %102 = vector.load %arg3[%c32, %c0_33] : memref<40x32xbf16, #tpu.memory_space<vmem>>, vector<8x32xbf16>
    %cst_34 = arith.constant dense<0.000000e+00> : vector<8x32xf32>
    %103 = tpu.matmul %101, %102, %cst_34 {dimension_numbers = #tpu.dot_dimension_numbers<[1], [0], [0], [1], [0, 0, 1, 1], [], []>} : vector<8x8xbf16>, vector<8x32xbf16>, vector<8x32xf32> -> vector<8x32xf32>
    %104 = arith.addf %84, %103 : vector<8x32xf32>
    %c0_35 = arith.constant 0 : index
    %c0_36 = arith.constant 0 : index
    %105 = vector.load %arg4[%c0_35, %c0_36] : memref<8x32xf32, #tpu.memory_space<vmem>>, vector<8x32xf32>
    tpu.vector_store %arg4[%c0_35, %c0_36], %104 {strides = array<i32>} : memref<8x32xf32, #tpu.memory_space<vmem>>, vector<8x32xf32>,
    return
  }
  func.func @transform_0(%arg0: i32) -> (i32, i32) {
    %c0_i32 = arith.constant 0 : i32
    %c0_i32_0 = arith.constant 0 : i32
    return %arg0, %c0_i32 : i32, i32
  }
  func.func @transform_1(%arg0: i32) -> (i32, i32) {
    %c0_i32 = arith.constant 0 : i32
    %c0_i32_0 = arith.constant 0 : i32
    %c0_i32_1 = arith.constant 0 : i32
    return %c0_i32, %c0_i32_0 : i32, i32
  }
  func.func @transform_2(%arg0: i32) -> (i32, i32) {
    %c0_i32 = arith.constant 0 : i32
    %c0_i32_0 = arith.constant 0 : i32
    %c0_i32_1 = arith.constant 0 : i32
    return %c0_i32, %c0_i32_0 : i32, i32
  }
  func.func @transform_3(%arg0: i32) -> (i32, i32) {
    %c0_i32 = arith.constant 0 : i32
    %c0_i32_0 = arith.constant 0 : i32
    return %arg0, %c0_i32 : i32, i32
  }
}

</mosaic_0001>

<bundles_post_ra>
// kernel: tpu_custom_call.1
= control target key start
LH: loop header
LB: loop body
LE: loop exit
PB: predicated region body
PF: predicated region fallthrough
CT: control target
= control target key end

     0   :  { %8 = vsyncpa [#allocation3], 0  ;;  %s1663_s0 = inlined_call_operand.vmem [shape: bf16[16,32], index: 0, kind: input, shape index: {}]   ;;  %s1664_s1 = inlined_call_operand.vmem [shape: bf16[32,120], index: 1, kind: input, shape index: {}]   ;;  %s1665_s2 = inlined_call_operand.vmem [shape: bf16[40,32], index: 2, kind: input, shape index: {}]   ;;  %s1666_s3 = inlined_call_operand.hbm [shape: f32[16,32], index: 3, kind: output, shape index: {}]  }
   0x1   :  { %10 = vsyncpa [#allocation3 + $0x1], 0  ;;  %s1432_s12 = smov 0   ;;  %s1434_s13 = smov 0  }
   0x2   :  { %s1436_s14 = smov 0   ;;  %s1438_s15 = smov 0  }
   0x3 LB: > { %s1453_s16 = sadd.s32 4294967295, %s1393_s15   ;;  %s1097_s17 = sadd.s32 4294967294, %s1393_s15   ;;  %s1393_s15 = sphi %s1438_s15, %s1672_s15   ;;  %s1389_s14 = sphi %s1436_s14, %s1671_s14   ;;  %s1385_s13 = sphi %s1434_s13, %s1670_s13   ;;  %s1381_s12 = sphi %s1432_s12, %s1669_s12  }
   0x4   : > { %s1457_s18 = sadd.s32 1, %s1393_s15   ;;  %s91_s19 = sadd.s32 1, %s1389_s14 }
   0x5   : > { %s88_s20 = ssub.s32 %s1393_s15, %s1457_s18  ;;  %p101_p0 = scmp.ne.s32.totalorder %s1389_s14, %s1385_s13 }
   0x6   : > { %p89_p1 = scmp.eq.s32.totalorder %s88_s20, 0  ;;  %p102_p2 = scmp.eq.s32.totalorder %s1453_s16, 1 }
   0x7   : > { %p107_p3 = scmp.ne.s32.totalorder %s1385_s13, %s1381_s12  ;;  %p108_p4 = scmp.eq.s32.totalorder %s1097_s17, 1 }
   0x8   : > { %s1468_s21 = scalar_select %p89_p1, %s1389_s14, %s91_s19  }
   0x9   : > { %p1470_p5 = por %p102_p2, %p101_p0  ;;  %p1474_p6 = por %p108_p4, %p107_p3 }
   0xa   : > { %p1100_p7 = scmp.ge.s32.totalorder %s1393_s15, 1  ;;  %p139_p8 = scmp.lt.s32.totalorder %s1393_s15, 3 }
   0xc   : > { %p140_p9 = pnand %p1100_p7, %p139_p8 }
   0xd   : > { %p162_p10 = scmp.lt.s32.totalorder (!%p140_p9), %s1453_s16, 1  ;;  %s1397_s6 = smov (!%p140_p9), 120  }
   0xe   : > { %143 = sbr.rel (%p140_p9) target bundleno = 3005 (0xbbd), region = 32  ;;  %s1398_s7 = smov (!%p140_p9), 88  }
   0xf   : > { %s1399_s8 = smov (!%p140_p9), 80   ;;  %s1400_s9 = smov (!%p140_p9), 48  }
  0x10   : > { %s1401_s10 = smov (!%p140_p9), 40   ;;  %s1402_s11 = smov (!%p140_p9), 112  }
  0x11   : > { %s1403_s17 = smov (!%p140_p9), 72   ;;  %s1404_s26 = smov (!%p140_p9), 64  }
  0x12   : > { %s1405_s27 = smov (!%p140_p9), 104   ;;  %s1407_s4 = smov (!%p140_p9), 24  }
  0x13   : > { %v1311_v0 = vld [vmem:[%s1664_s1 + $0x8] sm:$0xff]   ;;  %v1395_v1 = vmov 0.0   ;;  %v1312_v2 = vld [vmem:[%s1664_s1] sm:$0xff]   ;;  %vm1396_vm0 = vmmov 0   ;;  %s163_s28 = scalar_select %p162_p10, %s1453_s16, 1  ;;  %vm184_vm1 = vcmask 261120  }
  0x14   : > { %1158 = vmatprep.subr.bf16.mxu0 %v1395_v1  ;;  %1166 = vmatprep.subr.bf16.mxu1 %v1395_v1  ;;  %vm232_vm2 = vcmask 64512   ;;  %vm296_vm3 = vcmask 1043456   ;;  %v341_v46 = vld [vmem:[%s1665_s2] sm:$0xf]  ;;  %v453_v48 = vld [vmem:[%s1665_s2 + $0x4] sm:$0xf] }
  0x15   : > { %1159 = vmatpush3.bf16.msra.mxu0 %v1311_v0  ;;  %1162 = vmatprep.mubr.msk.bf16.mxu0 %vm1396_vm0, %v1395_v1  ;;  %s1102_s29 = sshll.u32 %s163_s28, 2  ;;  %v504_v47 = vsel %vm296_vm3, %v341_v46, 0  ;;  %v458_v49 = vsel %vm296_vm3, %v453_v48, 0  ;;  %s1406_s28 = smov 32  }
  0x16   : > { %1160 = vmatprep.subr.bf16.mxu0 %v1395_v1  ;;  %1168 = vmatprep.mubr.msk.bf16.mxu1 %vm1396_vm0, %v1395_v1  ;;  %s165_s5 = scalar_lea.vmem %s1663_s0, %s1102_s29  ;;  %s1122_s20 = sshll.u32 %s1453_s16, 7 }
  0x17   : > { %v167_v3 = vld [vmem:[%s165_s5] sm:$0xf]  ;;  %s1408_s5 = smov 96   ;;  %s1411_s30 = smov [#allocation2]  }
  0x19   : > { %1161 = vmatpush3.bf16.msra.mxu0 %v1312_v2 }
  0x1a   : > { %1172 = vmatprep.subr.bf16.mxu0 %v1395_v1 }
  0x1c   : > { %1163 = vmatmul.mubr.msk.bf16.vlgmr.msra.gmra.mxu0 %vm184_vm1, %v167_v3 }
  0x1d   : > { %1174 = vmatprep.mubr.msk.bf16.mxu0 %vm1396_vm0, %v1395_v1 }
  0xdc   : > { %v222_v4 = vpop.f32.mrf.mxu0 }
  0xdd   : > { %v1502_v5 = vpack.c.bf16 %v222_v4, %v222_v4 }
  0xde   : > { %v1164_v6 = vpop.f32.mrf.mxu0 }
  0xdf   : > { %342 = vrot.lane.b32.xlu1 %v1502_v5, %s1397_s6  ;;  %230 = vrot.lane.b32.xlu0 %v1502_v5, %s1398_s7  ;;  %s1409_s6 = smov 56  }
  0xe0   : > { %v225_v7 = vpop.f32.mrf.mxu0 }
  0xe2   : > { %v1165_v8 = vpop.f32.mrf.mxu0 }
  0xe3   : > { %344 = vrot.lane.b32.xlu0 %v1502_v5, %s1399_s8 }
 0x151   : > { %v231_v9 = vpop.permute.xlu0 %230  ;;  %v343_v13 = vpop.permute.xlu1 %342 }
 0x152   : > { %v237_v10 = vsel %vm232_vm2, %v231_v9, 0 }
 0x153   : > { %1167 = vmatpush3.bf16.xpose.msra.mxu1 %v237_v10 }
 0x154   : > { %1178 = vmatprep.subr.bf16.mxu1 %v1395_v1 }
 0x155   : > { %v345_v11 = vpop.permute.xlu0 %344 }
 0x156   : > { %v350_v12 = vsel %vm232_vm2, %v345_v11, 0 }
 0x15a   : > { %1169 = vmatmul.mubr.msk.bf16.vlgmr.msra.gmra.mxu1 %vm232_vm2, %v1502_v5 }
 0x15b   : > { %1179 = vmatpush3.bf16.xpose.msra.mxu1 %v350_v12  ;;  %1180 = vmatprep.mubr.msk.bf16.mxu1 %vm1396_vm0, %v1395_v1 }
 0x15c   : > { %1190 = vmatprep.subr.bf16.mxu1 %v1395_v1 }
 0x162   : > { %1181 = vmatmul.mubr.msk.bf16.vlgmr.msra.gmra.mxu1 %vm232_vm2, %v343_v13 }
 0x163   : > { %1192 = vmatprep.mubr.msk.bf16.mxu1 %vm1396_vm0, %v1395_v1  ;;  %1191 = vmatpush3.bf16.msra.mxu1 %v458_v49 }
 0x164   : > { %1202 = vmatprep.subr.bf16.mxu1 %v1395_v1 }
 0x21a   : > { %v273_v14 = vpop.f32.mrf.mxu1 }
 0x21b   : > { %v279_v15 = vsel %vm232_vm2, %v273_v14, -inf }
 0x21c   : > { %280 = vmax.xlane.f32.xlu1 %v279_v15  ;;  %v1170_v16 = vpop.f32.mrf.mxu1 }
 0x21e   : > { %v276_v17 = vpop.f32.mrf.mxu1 }
 0x220   : > { %v1171_v18 = vpop.f32.mrf.mxu1 }
 0x222   : > { %v386_v19 = vpop.f32.mrf.mxu1 }
 0x223   : > { %v392_v20 = vsel %vm232_vm2, %v386_v19, -inf }
 0x224   : > { %393 = vmax.xlane.f32.xlu0 %v392_v20  ;;  %v1182_v21 = vpop.f32.mrf.mxu1 }
 0x226   : > { %v389_v22 = vpop.f32.mrf.mxu1 }
 0x228   : > { %v1183_v23 = vpop.f32.mrf.mxu1 }
 0x2a5   : > { %v281_v24 = vpop.xlane.xlu1 %280 }
 0x2a6   : > { %v282_v25 = vsub.f32 %v273_v14, %v281_v24 }
 0x2a8   : > { %v283_v26 = vmul.f32 1.442695, %v282_v25 }
 0x2aa   : > { %1313 = vpow2.f32 %v283_v26 }
 0x2ad   : > { %v394_v27 = vpop.xlane.xlu0 %393 }
 0x2ae   : > { %v395_v28 = vsub.f32 %v386_v19, %v394_v27 }
 0x2b0   : > { %v396_v29 = vmul.f32 1.442695, %v395_v28 }
 0x2b2   : > { %1315 = vpow2.f32 %v396_v29  ;;  %v657_v29 = vld [vmem:[%s1665_s2 + $0x8] sm:$0xf] }
 0x2b7   : > { %v1314_v30 = vpop.eup %1313 }
 0x2b8   : > { %v285_v31 = vsel %vm232_vm2, %v1314_v30, 0.0 }
 0x2b9   : > { %286 = vadd.xlane.f32.xlu0 %v285_v31 }
 0x2bf   : > { %v1316_v32 = vpop.eup %1315 }
 0x2c0   : > { %v398_v33 = vsel %vm232_vm2, %v1316_v32, 0.0 }
 0x2c1   : > { %399 = vadd.xlane.f32.xlu1 %v398_v33 }
 0x2cf   : > { %291 = vrot.lane.b32.xlu0 %v1502_v5, %s1400_s9  ;;  %s1410_s9 = smov 16  }
 0x2d2   : > { %404 = vrot.lane.b32.xlu1 %v1502_v5, %s1401_s10 }
 0x2d3   : > { %546 = vrot.lane.b32.xlu0 %v1502_v5, %s1402_s11 }
 0x2d6   : > { %548 = vrot.lane.b32.xlu1 %v1502_v5, %s1403_s17  ;;  %s159_s17 = sand.u32 1, %s1385_s13  }
 0x2d7   : > { %s1101_s19 = sshll.u32 %s159_s17, 3  ;;  %s1025_s29 = scalar_lea.sflag [#allocation3], %s159_s17 }
 0x2d8   : > { %s161_s24 = scalar_lea.vmem [#allocation2], %s1101_s19 }
 0x2d9   : > { %s1038_s25 = sshll.u32 %s161_s24, 4  ;;  %s1623_s25 = int_to_ptr.vmem [resolvable:$true] %s1038_s25 }
 0x2da   : > { %s1333_s16 = scalar_lea.vmem %s1623_s25, 128 }
 0x2db   : > { %p1334_p11 = scmp.ne.s32.totalorder %s1623_s25, %s1333_s16 }
 0x2dd   : > { %p1335_p12 = pnand %p1334_p11, %p1470_p5 }
 0x2df   : > { %p1336_p13 = pneg %p1335_p12 }
 0x342   : > { %v287_v34 = vpop.xlane.xlu0 %286 }
 0x343   : > { %1317 = vrcp.f32 %v287_v34 }
 0x346   : > { %v292_v35 = vpop.permute.xlu0 %291 }
 0x347   : > { %v298_v36 = vsel %vm296_vm3, %v292_v35, 0 }
 0x348   : > { %1173 = vmatpush3.bf16.msra.mxu0 %v298_v36 }
 0x349   : > { %1184 = vmatprep.subr.bf16.mxu0 %v1395_v1 }
 0x34a   : > { %v400_v37 = vpop.xlane.xlu1 %399  ;;  %v547_v62 = vpop.permute.xlu0 %546 }
 0x34b   : > { %1319 = vrcp.f32 %v400_v37 }
 0x34e   : > { %v405_v40 = vpop.permute.xlu1 %404 }
 0x34f   : > { %v410_v42 = vsel %vm296_vm3, %v405_v40, 0 }
 0x350   : > { %v1318_v38 = vpop.eup %1317 }
 0x351   : > { %v289_v39 = vmul.f32 %v1318_v38, %v1314_v30  ;;  %v662_v30 = vsel %vm296_vm3, %v657_v29, 0 }
 0x352   : > { %v549_v55 = vpop.permute.xlu1 %548 }
 0x353   : > { %v290_v41 = vpack.c.bf16 %v289_v39, %v289_v39  ;;  %v554_v59 = vsel %vm232_vm2, %v549_v55, 0 }
 0x355   : > { %1175 = vmatmul.mubr.msk.bf16.vlgmr.msra.gmra.mxu0 %vm232_vm2, %v290_v41 }
 0x356   : > { %1185 = vmatpush3.bf16.msra.mxu0 %v410_v42  ;;  %1186 = vmatprep.mubr.msk.bf16.mxu0 %vm1396_vm0, %v1395_v1 }
 0x357   : > { %1196 = vmatprep.subr.bf16.mxu0 %v1395_v1 }
 0x358   : > { %v1320_v43 = vpop.eup %1319 }
 0x359   : > { %v402_v44 = vmul.f32 %v1320_v43, %v1316_v32 }
 0x35b   : > { %v403_v45 = vpack.c.bf16 %v402_v44, %v402_v44 }
 0x35d   : > { %1187 = vmatmul.mubr.msk.bf16.vlgmr.msra.gmra.mxu0 %vm232_vm2, %v403_v45 }
 0x35e   : > { %1198 = vmatprep.mubr.msk.bf16.mxu0 %vm1396_vm0, %v1395_v1  ;;  %1197 = vmatpush3.bf16.msra.mxu0 %v504_v47 }
 0x35f   : > { %1208 = vmatprep.subr.bf16.mxu0 %v1395_v1 }
 0x415   : > { %v334_v50 = vpop.f32.mrf.mxu0 }
 0x416   : > { %v340_v51 = vpack.c.bf16 %v334_v50, %v334_v50 }
 0x417   : > { %v1176_v52 = vpop.f32.mrf.mxu0 }
 0x418   : > { %1199 = vmatmul.mubr.msk.bf16.vlgmr.msra.gmra.mxu0 %vm232_vm2, %v340_v51 }
 0x419   : > { %v337_v53 = vpop.f32.mrf.mxu0  ;;  %1210 = vmatprep.mubr.msk.bf16.mxu0 %vm1396_vm0, %v1395_v1 }
 0x41b   : > { %v1177_v54 = vpop.f32.mrf.mxu0 }
 0x41d   : > { %v446_v56 = vpop.f32.mrf.mxu0 }
 0x41e   : > { %v452_v57 = vpack.c.bf16 %v446_v56, %v446_v56 }
 0x41f   : > { %v1188_v58 = vpop.f32.mrf.mxu0 }
 0x420   : > { %1193 = vmatmul.mubr.msk.bf16.vlgmr.msra.gmra.mxu1 %vm232_vm2, %v452_v57 }
 0x421   : > { %1203 = vmatpush3.bf16.xpose.msra.mxu1 %v554_v59  ;;  %v449_v60 = vpop.f32.mrf.mxu0  ;;  %1204 = vmatprep.mubr.msk.bf16.mxu1 %vm1396_vm0, %v1395_v1 }
 0x422   : > { %1214 = vmatprep.subr.bf16.mxu1 %v1395_v1  ;;  %v816_v60 = vld [vmem:[%s1665_s2 + $0xc] sm:$0xf] }
 0x423   : > { %v1189_v61 = vpop.f32.mrf.mxu0 }
 0x424   : > { %v821_v61 = vsel %vm296_vm3, %v816_v60, 0 }
 0x428   : > { %1205 = vmatmul.mubr.msk.bf16.vlgmr.msra.gmra.mxu1 %vm232_vm2, %v547_v62 }
 0x429   : > { %1216 = vmatprep.mubr.msk.bf16.mxu1 %vm1396_vm0, %v1395_v1  ;;  %1215 = vmatpush3.bf16.msra.mxu1 %v662_v30 }
 0x42a   : > { %1226 = vmatprep.subr.bf16.mxu1 %v1395_v1 }
 0x4d8   : > { %v540_v63 = vpop.f32.mrf.mxu0 }
 0x4da   : > { %v1200_v0 = vpop.f32.mrf.mxu0 }
 0x4dc   : > { %v543_v2 = vpop.f32.mrf.mxu0 }
 0x4de   : > { %v1201_v3 = vpop.f32.mrf.mxu0 }
 0x4e0   : > { %v494_v4 = vpop.f32.mrf.mxu1 }
 0x4e1   : > { %v1557_v6 = vadd.f32 %v540_v63, %v494_v4 }
 0x4e2   : > { %v1194_v7 = vpop.f32.mrf.mxu1 }
 0x4e4   : > { %v497_v8 = vpop.f32.mrf.mxu1 }
 0x4e6   : > { %v1195_v9 = vpop.f32.mrf.mxu1 }
 0x4e8   : > { %v590_v10 = vpop.f32.mrf.mxu1 }
 0x4e9   : > { %v596_v11 = vsel %vm232_vm2, %v590_v10, -inf }
 0x4ea   : > { %597 = vmax.xlane.f32.xlu1 %v596_v11  ;;  %v1206_v12 = vpop.f32.mrf.mxu1 }
 0x4ec   : > { %v593_v13 = vpop.f32.mrf.mxu1 }
 0x4ee   : > { %v1207_v14 = vpop.f32.mrf.mxu1 }
 0x4fb   : > { %707 = vrot.lane.b32.xlu1 %v1502_v5, %s1404_s26 }
 0x4ff   : > { %705 = vrot.lane.b32.xlu1 %v1502_v5, %s1405_s27 }
 0x573   : > { %v598_v15 = vpop.xlane.xlu1 %597 }
 0x574   : > { %v599_v16 = vsub.f32 %v590_v10, %v598_v15  ;;  %v975_v15 = vld [vmem:[%s1665_s2 + $0x10] sm:$0xf] }
 0x576   : > { %v600_v17 = vmul.f32 1.442695, %v599_v16 }
 0x577   : > { %v708_v25 = vpop.permute.xlu1 %707 }
 0x578   : > { %1321 = vpow2.f32 %v600_v17  ;;  %v713_v27 = vsel %vm232_vm2, %v708_v25, 0  ;;  %v980_v17 = vsel %vm296_vm3, %v975_v15, 0 }
 0x57b   : > { %v706_v28 = vpop.permute.xlu1 %705 }
 0x585   : > { %v1322_v18 = vpop.eup %1321 }
 0x586   : > { %v602_v19 = vsel %vm232_vm2, %v1322_v18, 0.0 }
 0x587   : > { %603 = vadd.xlane.f32.xlu0 %v602_v19 }
 0x59d   : > { %608 = vrot.lane.b32.xlu0 %v1502_v5, %s1406_s28  ;;  %s1621_s28 = scalar_lea.hbm %s1666_s3, %s1122_s20 }
 0x610   : > { %v604_v20 = vpop.xlane.xlu0 %603 }
 0x611   : > { %1323 = vrcp.f32 %v604_v20 }
 0x614   : > { %v609_v21 = vpop.permute.xlu0 %608 }
 0x615   : > { %v614_v22 = vsel %vm296_vm3, %v609_v21, 0 }
 0x616   : > { %1209 = vmatpush3.bf16.msra.mxu0 %v614_v22 }
 0x617   : > { %1220 = vmatprep.subr.bf16.mxu0 %v1395_v1 }
 0x61e   : > { %v1324_v23 = vpop.eup %1323 }
 0x61f   : > { %v606_v24 = vmul.f32 %v1324_v23, %v1322_v18 }
 0x621   : > { %v607_v26 = vpack.c.bf16 %v606_v24, %v606_v24 }
 0x623   : > { %1211 = vmatmul.mubr.msk.bf16.vlgmr.msra.gmra.mxu0 %vm232_vm2, %v607_v26 }
 0x624   : > { %1221 = vmatpush3.bf16.xpose.msra.mxu0 %v713_v27  ;;  %1222 = vmatprep.mubr.msk.bf16.mxu0 %vm1396_vm0, %v1395_v1 }
 0x625   : > { %1232 = vmatprep.subr.bf16.mxu0 %v1395_v1 }
 0x62b   : > { %1223 = vmatmul.mubr.msk.bf16.vlgmr.msra.gmra.mxu0 %vm232_vm2, %v706_v28 }
 0x62c   : > { %1234 = vmatprep.mubr.msk.bf16.mxu0 %vm1396_vm0, %v1395_v1  ;;  %1233 = vmatpush3.bf16.msra.mxu0 %v821_v61 }
 0x62d   : > { %1244 = vmatprep.subr.bf16.mxu0 %v1395_v1 }
 0x6e3   : > { %v650_v31 = vpop.f32.mrf.mxu0 }
 0x6e4   : > { %v656_v32 = vpack.c.bf16 %v650_v31, %v650_v31 }
 0x6e5   : > { %v1212_v33 = vpop.f32.mrf.mxu0 }
 0x6e6   : > { %1217 = vmatmul.mubr.msk.bf16.vlgmr.msra.gmra.mxu1 %vm232_vm2, %v656_v32 }
 0x6e7   : > { %v653_v34 = vpop.f32.mrf.mxu0  ;;  %1228 = vmatprep.mubr.msk.bf16.mxu1 %vm1396_vm0, %v1395_v1 }
 0x6e9   : > { %v1213_v35 = vpop.f32.mrf.mxu0 }
 0x6eb   : > { %v749_v36 = vpop.f32.mrf.mxu0 }
 0x6ec   : > { %v755_v37 = vsel %vm232_vm2, %v749_v36, -inf }
 0x6ed   : > { %756 = vmax.xlane.f32.xlu0 %v755_v37  ;;  %v1224_v38 = vpop.f32.mrf.mxu0 }
 0x6ef   : > { %v752_v39 = vpop.f32.mrf.mxu0 }
 0x6f1   : > { %v1225_v40 = vpop.f32.mrf.mxu0 }
 0x703   : > { %767 = vrot.lane.b32.xlu0 %v1502_v5, %s1407_s4  ;;  %s1337_s4 = sshll.u32 %s1411_s30, 4  ;;  %s1338_s4 = int_to_ptr.vmem [resolvable:$false] %s1337_s4 }
 0x704   : > { %p1340_p0 = scmp.lt.s32.totalorder %s1623_s25, %s1338_s4 }
 0x707   : > { %864 = vrot.lane.b32.xlu0 %v1502_v5, %s1408_s5  ;;  %s1339_s5 = scalar_lea.vmem %s1338_s4, 256 }
 0x708   : > { %p1341_p1 = scmp.lt.s32.totalorder %s1339_s5, %s1333_s16 }
 0x70a   : > { %p1342_p2 = por %p1341_p1, %p1340_p0 }
 0x70c   : > { %p1343_p3 = pnand %p1342_p2, %p1336_p13 }
 0x776   : > { %v757_v41 = vpop.xlane.xlu0 %756 }
 0x777   : > { %v758_v42 = vsub.f32 %v749_v36, %v757_v41 }
 0x779   : > { %v759_v43 = vmul.f32 1.442695, %v758_v42 }
 0x77a   : > { %v768_v44 = vpop.permute.xlu0 %767 }
 0x77b   : > { %1325 = vpow2.f32 %v759_v43  ;;  %v773_v45 = vsel %vm296_vm3, %v768_v44, 0 }
 0x77c   : > { %1227 = vmatpush3.bf16.msra.mxu1 %v773_v45 }
 0x77d   : > { %1238 = vmatprep.subr.bf16.mxu1 %v1395_v1 }
 0x77e   : > { %v865_v59 = vpop.permute.xlu0 %864 }
 0x788   : > { %v1326_v46 = vpop.eup %1325 }
 0x789   : > { %v761_v47 = vsel %vm232_vm2, %v1326_v46, 0.0 }
 0x78a   : > { %762 = vadd.xlane.f32.xlu1 %v761_v47 }
 0x79b   : > { %866 = vrot.lane.b32.xlu1 %v1502_v5, %s1409_s6 }
 0x7a6   : > { %v698_v48 = vpop.f32.mrf.mxu1 }
 0x7a7   : > { %v704_v49 = vadd.f32 %v698_v48, %v1557_v6 }
 0x7a8   : > { %v1218_v50 = vpop.f32.mrf.mxu1 }
 0x7aa   : > { %v701_v51 = vpop.f32.mrf.mxu1 }
 0x7ac   : > { %v1219_v52 = vpop.f32.mrf.mxu1 }
 0x813   : > { %v763_v53 = vpop.xlane.xlu1 %762 }
 0x814   : > { %1327 = vrcp.f32 %v763_v53 }
 0x817   : > { %v867_v56 = vpop.permute.xlu1 %866 }
 0x818   : > { %v872_v58 = vsel %vm232_vm2, %v867_v56, 0 }
 0x821   : > { %v1328_v54 = vpop.eup %1327 }
 0x822   : > { %v765_v55 = vmul.f32 %v1328_v54, %v1326_v46 }
 0x824   : > { %v766_v57 = vpack.c.bf16 %v765_v55, %v765_v55 }
 0x826   : > { %1229 = vmatmul.mubr.msk.bf16.vlgmr.msra.gmra.mxu1 %vm232_vm2, %v766_v57 }
 0x827   : > { %1239 = vmatpush3.bf16.xpose.msra.mxu1 %v872_v58  ;;  %1240 = vmatprep.mubr.msk.bf16.mxu1 %vm1396_vm0, %v1395_v1 }
 0x828   : > { %1250 = vmatprep.subr.bf16.mxu1 %v1395_v1 }
 0x82e   : > { %1241 = vmatmul.mubr.msk.bf16.vlgmr.msra.gmra.mxu1 %vm232_vm2, %v865_v59 }
 0x82f   : > { %1252 = vmatprep.mubr.msk.bf16.mxu1 %vm1396_vm0, %v1395_v1  ;;  %1251 = vmatpush3.bf16.msra.mxu1 %v980_v17 }
 0x8e6   : > { %v809_v62 = vpop.f32.mrf.mxu1 }
 0x8e7   : > { %v815_v63 = vpack.c.bf16 %v809_v62, %v809_v62 }
 0x8e8   : > { %v1230_v0 = vpop.f32.mrf.mxu1 }
 0x8e9   : > { %1235 = vmatmul.mubr.msk.bf16.vlgmr.msra.gmra.mxu0 %vm232_vm2, %v815_v63 }
 0x8ea   : > { %v812_v2 = vpop.f32.mrf.mxu1  ;;  %1246 = vmatprep.mubr.msk.bf16.mxu0 %vm1396_vm0, %v1395_v1 }
 0x8ec   : > { %v1231_v3 = vpop.f32.mrf.mxu1 }
 0x8ee   : > { %v908_v4 = vpop.f32.mrf.mxu1 }
 0x8ef   : > { %v914_v6 = vsel %vm232_vm2, %v908_v4, -inf }
 0x8f0   : > { %915 = vmax.xlane.f32.xlu1 %v914_v6  ;;  %v1242_v7 = vpop.f32.mrf.mxu1 }
 0x8f2   : > { %v911_v8 = vpop.f32.mrf.mxu1 }
 0x8f4   : > { %v1243_v9 = vpop.f32.mrf.mxu1 }
 0x979   : > { %v916_v10 = vpop.xlane.xlu1 %915 }
 0x97a   : > { %v917_v11 = vsub.f32 %v908_v4, %v916_v10 }
 0x97c   : > { %v918_v12 = vmul.f32 1.442695, %v917_v11 }
 0x97e   : > { %1329 = vpow2.f32 %v918_v12 }
 0x98b   : > { %v1330_v13 = vpop.eup %1329 }
 0x98c   : > { %v920_v14 = vsel %vm232_vm2, %v1330_v13, 0.0 }
 0x98d   : > { %921 = vadd.xlane.f32.xlu0 %v920_v14 }
 0x9a3   : > { %926 = vrot.lane.b32.xlu0 %v1502_v5, %s1410_s9 }
 0x9a9   : > { %v857_v1 = vpop.f32.mrf.mxu0 }
 0x9aa   : > { %v863_v16 = vadd.f32 %v857_v1, %v704_v49 }
 0x9ab   : > { %v1236_v18 = vpop.f32.mrf.mxu0 }
 0x9ad   : > { %v860_v19 = vpop.f32.mrf.mxu0 }
 0x9af   : > { %v1237_v20 = vpop.f32.mrf.mxu0 }
 0xa16   : > { %v922_v21 = vpop.xlane.xlu0 %921 }
 0xa17   : > { %1331 = vrcp.f32 %v922_v21 }
 0xa1a   : > { %v927_v22 = vpop.permute.xlu0 %926 }
 0xa1b   : > { %v932_v23 = vsel %vm296_vm3, %v927_v22, 0 }
 0xa1c   : > { %1245 = vmatpush3.bf16.msra.mxu0 %v932_v23 }
 0xa24   : > { %v1332_v5 = vpop.eup %1331 }
 0xa25   : > { %v924_v24 = vmul.f32 %v1332_v5, %v1330_v13 }
 0xa27   : > { %v925_v25 = vpack.c.bf16 %v924_v24, %v924_v24 }
 0xa29   : > { %1247 = vmatmul.mubr.msk.bf16.vlgmr.msra.gmra.mxu0 %vm232_vm2, %v925_v25 }
 0xae9   : > { %v968_v26 = vpop.f32.mrf.mxu0 }
 0xaea   : > { %v974_v27 = vpack.c.bf16 %v968_v26, %v968_v26 }
 0xaeb   : > { %v1248_v28 = vpop.f32.mrf.mxu0 }
 0xaec   : > { %1253 = vmatmul.mubr.msk.bf16.vlgmr.msra.gmra.mxu1 %vm232_vm2, %v974_v27 }
 0xaed   : > { %v971_v29 = vpop.f32.mrf.mxu0 }
 0xaef   : > { %v1249_v30 = vpop.f32.mrf.mxu0 }
 0xbac   : > { %v1016_v31 = vpop.f32.mrf.mxu1 }
 0xbad   : > { %v1022_v32 = vadd.f32 %v1016_v31, %v863_v16 }
 0xbae   : > { %v1254_v33 = vpop.f32.mrf.mxu1 }
 0xbaf   : > { %1023 = vst.msk [vmem:[%s161_s24] sm:$0xff] %vm184_vm1, %v1022_v32 }
 0xbb0   : > { %v1019_v34 = vpop.f32.mrf.mxu1 }
 0xbb1   : > { %1346 = shalt.err (!%p1343_p3)
}
 0xbb2   : > { %s1347_s6 = scalar_lea.hbm %s1621_s28, 128  ;;  %s1351_s9 = scalar_lea.hbm %s1666_s3, 256 }
 0xbb3   : > { %p1348_p4 = scmp.ne.s32.totalorder %s1621_s28, %s1347_s6  ;;  %p1352_p9 = scmp.lt.s32.totalorder %s1621_s28, %s1666_s3 }
 0xbb4   : > { %p1353_p10 = scmp.lt.s32.totalorder %s1351_s9, %s1347_s6 }
 0xbb5   : > { %p1349_p7 = pnand %p1348_p4, %p1470_p5 }
 0xbb6   : > { %p1354_p11 = por %p1353_p10, %p1352_p9 }
 0xbb7   : > { %p1350_p8 = pneg %p1349_p7 }
 0xbb9   : > { %p1355_p12 = pnand %p1354_p11, %p1350_p8 }
 0xbbb   : > { %1358 = shalt.err (!%p1355_p12)
}
 0xbbc   : > { %1256 = dma.vmem_to_hbm [thread:$0]  (%p1470_p5), %s1623_s25, 128, %s1621_s28, %s1025_s29   ;;  %v1255_v35 = vpop.f32.mrf.mxu1 }
 0xbbd PF: > { %p1262_p13 = scmp.ge.s32.totalorder %s1393_s15, 2  ;;  %s1050_s17 = sand.u32 1, %s1381_s12  }
 0xbbe   : > { %s1051_s19 = scalar_lea.sflag [#allocation3], %s1050_s17 }
 0xbbf   : > { %p1259_p0 = pnand %p1262_p13, %p1474_p6 }
 0xbc1   : > { %p1260_p1 = pneg %p1259_p0 }
 0xbc3   : > { %1376 = dma.done.wait (%p1260_p1), %s1051_s19, 128  }
 0xbc4   : > { %1378 = vsyncadd (%p1260_p1), %s1051_s19, 4294967168  ;;  %p13_p2 = scmp.ge.s32.totalorder %s1457_s18, 4   ;;  %s1669_s12 = smov %s1385_s13 }
 0xbc5   : > { %s1670_s13 = smov %s1389_s14  ;;  %s1671_s14 = smov %s1468_s21 }
 0xbc6   : > { %s1672_s15 = smov %s1457_s18  ;;  %15 = sbr.rel (!%p13_p2) target bundleno = 3 (0x3), region = 67 }
 0xbcb   :  { %1056 = vsyncpa [#allocation3], 1 }
 0xbcc   :  { %1058 = vsyncpa [#allocation3 + $0x1], 1 }

</bundles_post_ra>
